<compile_context>
chip_gen: v7x
topology: tpu7x:2x2x1
jax: 0.10.0
libtpu: 0.0.40
codegen_flags: <defaults>
</compile_context>

<pallas_src>
import functools

import numpy as np
import jax
import jax.numpy as jnp
from jax import lax
from jax.experimental import pallas as pl
from jax.experimental.pallas import tpu as pltpu

_EPS = 1e-5
_SLOPE = 0.2
_BN_ROWS_CAP = 2048      # max rows per step for the elementwise BN-apply pass


def _round_up(x, m):
    return (x + m - 1) // m * m


def _cdiv(a, b):
    return -(-a // b)


# ------------------------------ Pallas kernels -------------------------------
def _matmul_bias_act_kernel(x_ref, w_ref, b_ref, o_ref, *, use_lrelu):
    """Full-K matmul + bias (+ LeakyReLU) for layers without BatchNorm."""
    z = jnp.dot(x_ref[...], w_ref[...],
                preferred_element_type=jnp.float32) + b_ref[...]
    if use_lrelu:
        z = jnp.maximum(z, _SLOPE * z)
    o_ref[...] = z.astype(o_ref.dtype)


def _matmul_stats_kernel(x_ref, w_ref, y_ref, sum_ref, ssq_ref):
    """Full-K matmul + per-M-tile partial channel sum / sum-of-squares.

    Partial stats are written as an (8, Cpad) block per M tile (broadcast to
    all 8 sublanes); the host-side reduction reads rows [0::8].  Zero-padded M
    rows contribute zero, so stats stay exact under M padding.
    """
    acc = jnp.dot(x_ref[...], w_ref[...], preferred_element_type=jnp.float32)
    y_ref[...] = acc.astype(y_ref.dtype)
    s = jnp.sum(acc, axis=0, keepdims=True)            # (1, Cpad)
    q = jnp.sum(acc * acc, axis=0, keepdims=True)      # (1, Cpad)
    sum_ref[...] = jnp.broadcast_to(s, sum_ref.shape)
    ssq_ref[...] = jnp.broadcast_to(q, ssq_ref.shape)


def _scale_shift_lrelu_kernel(y_ref, s_ref, t_ref, o_ref):
    """BatchNorm pass 2: folded per-channel scale/shift + LeakyReLU."""
    z = y_ref[...].astype(jnp.float32) * s_ref[...] + t_ref[...]
    z = jnp.maximum(z, _SLOPE * z)
    o_ref[...] = z.astype(o_ref.dtype)


# ------------------------------- pallas_call wrappers -------------------------
def matmul_bias_act(patches, w, bias, *, use_lrelu, tm, vmem_limit):
    m_pad, k = patches.shape
    c_pad = w.shape[1]
    cost = pl.CostEstimate(
        flops=2 * m_pad * k * c_pad, transcendentals=0,
        bytes_accessed=m_pad * k * 2 + k * c_pad * 2 + m_pad * c_pad * 2
        + c_pad * 4)
    return pl.pallas_call(
        functools.partial(_matmul_bias_act_kernel, use_lrelu=use_lrelu),
        out_shape=jax.ShapeDtypeStruct((m_pad, c_pad), jnp.bfloat16),
        grid_spec=pltpu.PrefetchScalarGridSpec(
            num_scalar_prefetch=0,
            grid=(m_pad // tm,),
            in_specs=[pl.BlockSpec((tm, k), lambda i: (i, 0)),
                      pl.BlockSpec((k, c_pad), lambda i: (0, 0)),   # resident
                      pl.BlockSpec((1, c_pad), lambda i: (0, 0))],
            out_specs=pl.BlockSpec((tm, c_pad), lambda i: (i, 0))),
        compiler_params=pltpu.CompilerParams(
            dimension_semantics=("parallel",),
            vmem_limit_bytes=vmem_limit),
        cost_estimate=cost,
    )(patches, w, bias)


def matmul_with_stats(patches, w, *, tm, vmem_limit):
    m_pad, k = patches.shape
    c_pad = w.shape[1]
    n_tiles = m_pad // tm
    cost = pl.CostEstimate(
        flops=2 * m_pad * k * c_pad, transcendentals=0,
        bytes_accessed=m_pad * k * 2 + k * c_pad * 2 + m_pad * c_pad * 2
        + 2 * 8 * n_tiles * c_pad * 4)
    return pl.pallas_call(
        _matmul_stats_kernel,
        out_shape=(jax.ShapeDtypeStruct((m_pad, c_pad), jnp.bfloat16),
                   jax.ShapeDtypeStruct((8 * n_tiles, c_pad), jnp.float32),
                   jax.ShapeDtypeStruct((8 * n_tiles, c_pad), jnp.float32)),
        grid_spec=pltpu.PrefetchScalarGridSpec(
            num_scalar_prefetch=0,
            grid=(n_tiles,),
            in_specs=[pl.BlockSpec((tm, k), lambda i: (i, 0)),
                      pl.BlockSpec((k, c_pad), lambda i: (0, 0))],  # resident
            out_specs=[pl.BlockSpec((tm, c_pad), lambda i: (i, 0)),
                       pl.BlockSpec((8, c_pad), lambda i: (i, 0)),
                       pl.BlockSpec((8, c_pad), lambda i: (i, 0))]),
        compiler_params=pltpu.CompilerParams(
            dimension_semantics=("parallel",),
            vmem_limit_bytes=vmem_limit),
        cost_estimate=cost,
    )(patches, w)


def bn_lrelu_apply(y, scale, shift, *, tm_rows, vmem_limit):
    m_pad, c_pad = y.shape
    return pl.pallas_call(
        _scale_shift_lrelu_kernel,
        out_shape=jax.ShapeDtypeStruct((m_pad, c_pad), jnp.bfloat16),
        grid_spec=pltpu.PrefetchScalarGridSpec(
            num_scalar_prefetch=0,
            grid=(m_pad // tm_rows,),
            in_specs=[pl.BlockSpec((tm_rows, c_pad), lambda i: (i, 0)),
                      pl.BlockSpec((1, c_pad), lambda i: (0, 0)),
                      pl.BlockSpec((1, c_pad), lambda i: (0, 0))],
            out_specs=pl.BlockSpec((tm_rows, c_pad), lambda i: (i, 0))),
        compiler_params=pltpu.CompilerParams(
            dimension_semantics=("parallel",),
            vmem_limit_bytes=vmem_limit),
    )(y, scale, shift)


# ----------------------------- tiling / budgeting -----------------------------
def _vmem_budget_bytes():
    """VMEM budget with headroom; 128 MiB chips -> ~96 MiB, 64 MiB -> ~48 MiB."""
    try:
        cap = int(pltpu.get_tpu_info().vmem_capacity_bytes)
    except Exception:
        cap = 64 * 1024 * 1024          # conservative (v7x-sized) fallback
    return min(int(cap * 3 // 4), 96 * 1024 * 1024)


def _choose_tm(m, k, c_pad, budget, tm_target):
    """Largest M tile that fits the VMEM budget, rounded to 16, balanced."""
    def fits(tm):
        b = 2 * tm * k * 2            # patch tiles, bf16, double-buffered
        b += 2 * k * c_pad * 2        # resident weight (x2 safety margin)
        b += 2 * tm * c_pad * 2       # bf16 output tiles, double-buffered
        b += tm * c_pad * 4           # f32 matmul result temp
        b += 4 * 8 * c_pad * 4        # stats partial blocks (BN layers)
        return b <= budget

    tm_cap = max(16, _round_up(tm_target, 16))
    while tm_cap > 16 and not fits(tm_cap):
        tm_cap = max(16, _round_up(tm_cap // 2, 16))
    n_tiles = max(1, _cdiv(m, tm_cap))
    tm = _round_up(_cdiv(m, n_tiles), 16)     # balanced, multiple of 16
    return tm, n_tiles


def _bn_row_tile(m_pad, tm):
    """Largest multiple of tm that divides m_pad and is <= _BN_ROWS_CAP."""
    n_tiles = m_pad // tm
    best = tm
    for g in range(1, n_tiles + 1):
        if n_tiles % g == 0 and tm * g <= _BN_ROWS_CAP:
            best = tm * g
    return best


# --------------------------------- JAX glue -----------------------------------
def im2col_nhwc(x_nhwc, kh, kw, stride, pad):
    """NHWC -> (N*Hout*Wout, kh*kw*Cin) patches; K index order = (i, j, c)."""
    n, h, w, c = x_nhwc.shape
    xp = jnp.pad(x_nhwc, ((0, 0), (pad, pad), (pad, pad), (0, 0)))
    h_out = (h + 2 * pad - kh) // stride + 1
    w_out = (w + 2 * pad - kw) // stride + 1
    cols = []
    for i in range(kh):
        for j in range(kw):
            cols.append(xp[:, i:i + stride * h_out:stride,
                           j:j + stride * w_out:stride, :])
    patches = jnp.concatenate(cols, axis=-1)
    return patches.reshape(n * h_out * w_out, kh * kw * c), n, h_out, w_out


def pack_params(layers):
    """One-time packing: (Cout,Cin,kh,kw) f32 -> (K, Cpad) bf16; padded bias /
    gamma / beta (1, Cpad).  Padded channels are ZERO-padded (scale/shift 0)."""
    packed = []
    for layer in layers:
        w = layer["w"]
        c_out, c_in, kh, kw_ = w.shape
        k = kh * kw_ * c_in
        c_pad = _round_up(c_out, 128)          # lane-dense output / MXU N dim
        # (Cout,Cin,kh,kw) -> (kh,kw,Cin,Cout) -> (K,Cout): matches im2col (i,j,c).
        w_mat = jnp.transpose(w, (2, 3, 1, 0)).reshape(k, c_out)
        w_p = jnp.pad(w_mat, ((0, 0), (0, c_pad - c_out))).astype(jnp.bfloat16)
        entry = dict(w=w_p, k=k, c_out=c_out, c_pad=c_pad, kh=kh, kw=kw_,
                     stride=layer["stride"], use_bn=layer["use_bn"],
                     use_lrelu=layer["use_lrelu"])
        if layer["use_bn"]:
            entry["gamma"] = jnp.pad(layer["gamma"],
                                     (0, c_pad - c_out)).reshape(1, c_pad)
            entry["beta"] = jnp.pad(layer["beta"],
                                    (0, c_pad - c_out)).reshape(1, c_pad)
        else:
            bias = (layer["b"] if layer["b"] is not None
                    else jnp.zeros((c_out,), jnp.float32))
            entry["bias"] = jnp.pad(bias, (0, c_pad - c_out)).reshape(
                1, c_pad).astype(jnp.float32)
        packed.append(entry)
    return packed


def conv_block_nhwc(x_nhwc, layer, budget, tm_target):
    patches, n, h_out, w_out = im2col_nhwc(
        x_nhwc, layer["kh"], layer["kw"], layer["stride"], pad=1)
    m, k = patches.shape
    c_pad = layer["c_pad"]

    tm, n_tiles = _choose_tm(m, k, c_pad, budget, tm_target)
    m_pad = tm * n_tiles
    # M-pad only (no K pad); zero rows contribute zero to BN stats.
    patches_p = jnp.pad(patches, ((0, m_pad - m), (0, 0)))

    if layer["use_bn"]:
        y, sum_p, ssq_p = matmul_with_stats(patches_p, layer["w"],
                                            tm=tm, vmem_limit=budget)
        ch_sum = jnp.sum(sum_p[0::8], axis=0, keepdims=True)   # (1, Cpad)
        ch_ssq = jnp.sum(ssq_p[0::8], axis=0, keepdims=True)
        inv_m = 1.0 / float(m)                                  # true M
        mean = ch_sum * inv_m
        var = jnp.maximum(ch_ssq * inv_m - mean * mean, 0.0)
        scale = (layer["gamma"] * lax.rsqrt(var + _EPS)).astype(jnp.float32)
        shift = (layer["beta"] - mean * scale).astype(jnp.float32)
        tm_rows = _bn_row_tile(m_pad, tm)
        out = bn_lrelu_apply(y, scale, shift, tm_rows=tm_rows,
                             vmem_limit=budget)
    else:
        out = matmul_bias_act(patches_p, layer["w"], layer["bias"],
                              use_lrelu=layer["use_lrelu"], tm=tm,
                              vmem_limit=budget)

    return out[:m, :layer["c_out"]].reshape(n, h_out, w_out, layer["c_out"])


def init_params(key, input_nc, ndf=64, n_layers=3):
    """Mirror the module structure (norm_layer=BatchNorm2d => use_bias=False on
    middle convs; first/last convs keep bias; BN gamma=1, beta=0)."""
    kw_ = 4
    cfgs = []  # (cin, cout, stride, use_bias, use_bn, use_lrelu)
    cfgs.append((input_nc, ndf, 2, True, False, True))
    nf_mult = 1
    for n in range(1, n_layers):
        nf_prev, nf_mult = nf_mult, min(2 ** n, 8)
        cfgs.append((ndf * nf_prev, ndf * nf_mult, 2, False, True, True))
    nf_prev, nf_mult = nf_mult, min(2 ** n_layers, 8)
    cfgs.append((ndf * nf_prev, ndf * nf_mult, 1, False, True, True))
    cfgs.append((ndf * nf_mult, 1, 1, True, False, False))

    keys = jax.random.split(key, 2 * len(cfgs))
    layers = []
    for idx, (cin, cout, stride, ub, ubn, ul) in enumerate(cfgs):
        bound = 1.0 / np.sqrt(cin * kw_ * kw_)
        w = jax.random.uniform(keys[2 * idx], (cout, cin, kw_, kw_),
                               jnp.float32, -bound, bound)
        b = (jax.random.uniform(keys[2 * idx + 1], (cout,), jnp.float32,
                                -bound, bound) if ub else None)
        gamma = jnp.ones((cout,), jnp.float32) if ubn else None
        beta = jnp.zeros((cout,), jnp.float32) if ubn else None
        layers.append(dict(w=w, b=b, gamma=gamma, beta=beta, stride=stride,
                           use_bias=ub, use_bn=ubn, use_lrelu=ul))
    return layers


def nlayer_discriminator(x_nchw, packed_layers):
    budget = _vmem_budget_bytes()
    tm_target = 1024 if budget >= 96 * 1024 * 1024 else 512
    # Single NCHW->NHWC transpose at the boundary; bf16 activations throughout.
    x = jnp.transpose(x_nchw, (0, 2, 3, 1)).astype(jnp.bfloat16)
    for layer in packed_layers:
        x = conv_block_nhwc(x, layer, budget, tm_target)
    return jnp.transpose(x, (0, 3, 1, 2)).astype(jnp.float32)


# Pure-JAX f32 reference (XLA conv) for correctness checking.
def reference_forward(x, layers):
    for layer in layers:
        s = layer["stride"]
        y = lax.conv_general_dilated(
            x, layer["w"], (s, s), ((1, 1), (1, 1)),
            dimension_numbers=("NCHW", "OIHW", "NCHW"))
        if layer["use_bias"]:
            y = y + layer["b"].reshape(1, -1, 1, 1)
        if layer["use_bn"]:
            mean = jnp.mean(y, axis=(0, 2, 3), keepdims=True)
            var = jnp.mean(jnp.square(y - mean), axis=(0, 2, 3), keepdims=True)
            y = (y - mean) * lax.rsqrt(var + _EPS)
            y = (y * layer["gamma"].reshape(1, -1, 1, 1)
                 + layer["beta"].reshape(1, -1, 1, 1))
        if layer["use_lrelu"]:
            y = jnp.where(y >= 0.0, y, _SLOPE * y)
        x = y
    return x


if __name__ == "__main__":
    key = jax.random.PRNGKey(0)
    kx, kp = jax.random.split(key)

    # Small config: input_nc=4, ndf=16, n_layers=3, input (2, 4, 32, 32).
    # (Spatial 32 is the smallest power of two for which all 5 PatchGAN convs
    #  produce valid sizes: 32->16->8->4->3->2.)
    input_nc, ndf, n_layers = 4, 16, 3
    x = jax.random.normal(kx, (2, input_nc, 32, 32), jnp.float32)
    layers = init_params(kp, input_nc, ndf=ndf, n_layers=n_layers)
    packed = pack_params(layers)          # one-time weight packing (not per call)

    out = jax.block_until_ready(nlayer_discriminator(x, packed))
    ref = jax.block_until_ready(reference_forward(x, layers))

    assert out.shape == (2, 1, 2, 2), out.shape
    assert bool(jnp.all(jnp.isfinite(out)))
    err = float(jnp.max(jnp.abs(out - ref)))
    scale = float(jnp.max(jnp.abs(ref)))
    assert err <= 7.5e-2 * max(1.0, scale), f"max abs err {err} (ref scale {scale})"
    print("KERNEL_OK")
</pallas_src>

<mosaic_0001>
module attributes {stable_mosaic.version = 11 : i64} {
  func.func @_matmul_bias_act_kernel(%arg0: i32, %arg1: memref<512x64xbf16, #tpu.memory_space<vmem>>, %arg2: memref<64x128xbf16, #tpu.memory_space<vmem>>, %arg3: memref<1x128xf32, #tpu.memory_space<vmem>>, %arg4: memref<512x128xbf16, #tpu.memory_space<vmem>>) attributes {dimension_semantics = [#tpu.dimension_semantics<parallel>], iteration_bounds = array<i64: 1>, scalar_prefetch = 0 : i64, scratch_operands = 0 : i64, tpu.core_type = #tpu.core_type<tc>, window_params = [{transform_indices = @transform_0, window_bounds = array<i64: 512, 64>}, {pipeline_mode = #tpu.pipeline_mode<synchronous>, transform_indices = @transform_1, window_bounds = array<i64: 64, 128>}, {pipeline_mode = #tpu.pipeline_mode<synchronous>, transform_indices = @transform_2, window_bounds = array<i64: 1, 128>}, {transform_indices = @transform_3, window_bounds = array<i64: 512, 128>}]} {
    %c0 = arith.constant 0 : index
    %c0_0 = arith.constant 0 : index
    %0 = vector.load %arg1[%c0, %c0_0] : memref<512x64xbf16, #tpu.memory_space<vmem>>, vector<512x64xbf16>
    %c0_1 = arith.constant 0 : index
    %c0_2 = arith.constant 0 : index
    %1 = vector.load %arg2[%c0_1, %c0_2] : memref<64x128xbf16, #tpu.memory_space<vmem>>, vector<64x128xbf16>
    %cst = arith.constant dense<0.000000e+00> : vector<512x128xf32>
    %2 = tpu.matmul %0, %1, %cst {dimension_numbers = #tpu.dot_dimension_numbers<[1], [0], [0], [1], [0, 0, 1, 1], [], []>} : vector<512x64xbf16>, vector<64x128xbf16>, vector<512x128xf32> -> vector<512x128xf32>
    %c0_3 = arith.constant 0 : index
    %c0_4 = arith.constant 0 : index
    %3 = vector.load %arg3[%c0_3, %c0_4] : memref<1x128xf32, #tpu.memory_space<vmem>>, vector<1x128xf32>
    %4 = vector.broadcast %3 : vector<1x128xf32> to vector<512x128xf32>
    %5 = arith.addf %2, %4 : vector<512x128xf32>
    %cst_5 = arith.constant 2.000000e-01 : f32
    %6 = vector.broadcast %cst_5 : f32 to vector<512x128xf32>
    %7 = arith.mulf %6, %5 : vector<512x128xf32>
    %8 = arith.maximumf %5, %7 : vector<512x128xf32>
    %9 = arith.truncf %8 : vector<512x128xf32> to vector<512x128xbf16>
    %c0_6 = arith.constant 0 : index
    %c0_7 = arith.constant 0 : index
    %10 = vector.load %arg4[%c0_6, %c0_7] : memref<512x128xbf16, #tpu.memory_space<vmem>>, vector<512x128xbf16>
    tpu.vector_store %arg4[%c0_6, %c0_7], %9 {strides = array<i32>} : memref<512x128xbf16, #tpu.memory_space<vmem>>, vector<512x128xbf16>,
    return
  }
  func.func @transform_0(%arg0: i32) -> (i32, i32) {
    %c0_i32 = arith.constant 0 : i32
    %c0_i32_0 = arith.constant 0 : i32
    return %arg0, %c0_i32 : i32, i32
  }
  func.func @transform_1(%arg0: i32) -> (i32, i32) {
    %c0_i32 = arith.constant 0 : i32
    %c0_i32_0 = arith.constant 0 : i32
    %c0_i32_1 = arith.constant 0 : i32
    return %c0_i32, %c0_i32_0 : i32, i32
  }
  func.func @transform_2(%arg0: i32) -> (i32, i32) {
    %c0_i32 = arith.constant 0 : i32
    %c0_i32_0 = arith.constant 0 : i32
    %c0_i32_1 = arith.constant 0 : i32
    return %c0_i32, %c0_i32_0 : i32, i32
  }
  func.func @transform_3(%arg0: i32) -> (i32, i32) {
    %c0_i32 = arith.constant 0 : i32
    %c0_i32_0 = arith.constant 0 : i32
    return %arg0, %c0_i32 : i32, i32
  }
}

</mosaic_0001>

<bundles_post_ra>
// kernel: tpu_custom_call.1
= control target key start
LH: loop header
LB: loop body
LE: loop exit
PB: predicated region body
PF: predicated region fallthrough
CT: control target
= control target key end

     0   :  { %vm279_vm0 = vcmask 523264   ;;  %s1940_s0 = inlined_call_operand.vmem [shape: bf16[512,64], index: 0, kind: input, shape index: {}]   ;;  %s1941_s1 = inlined_call_operand.vmem [shape: bf16[64,128], index: 1, kind: input, shape index: {}]   ;;  %s1942_s2 = inlined_call_operand.vmem [shape: f32[1,128], index: 2, kind: input, shape index: {}]   ;;  %s1943_s3 = inlined_call_operand.hbm [shape: bf16[512,128], index: 3, kind: output, shape index: {}]  }
   0x1   :  { %v1636_v0 = vld [vmem:[%s1941_s1] sm:$0xff]   ;;  %v1637_v1 = vld [vmem:[%s1941_s1 + $0x8] sm:$0xff]   ;;  %v1638_v2 = vld [vmem:[%s1941_s1 + $0x10] sm:$0xff]  }
   0x2   :  { %1553 = vmatprep.subr.bf16.mxu0 %v1636_v0  ;;  %1625 = vmatprep.subr.bf16.mxu1 %v1636_v0  ;;  %v1640_v3 = vld [vmem:[%s1940_s0] sm:$0xff]   ;;  %v1639_v5 = vld [vmem:[%s1941_s1 + $0x18] sm:$0xff]   ;;  %v1642_v6 = vld [vmem:[%s1940_s0 + $0x8] sm:$0xff]  }
   0x3   :  { %1554 = vmatpush3.bf16.msra.mxu0 %v1636_v0  ;;  %1629 = vmatpush3.bf16.msra.mxu1 %v1636_v0  ;;  %v1641_v4 = vld [vmem:[%s1940_s0 + $0x80] sm:$0xff]   ;;  %v1643_v7 = vld [vmem:[%s1940_s0 + $0x88] sm:$0xff]   ;;  %v1644_v8 = vld [vmem:[%s1940_s0 + $0x10] sm:$0xff]  }
   0x4   :  { %1555 = vmatprep.subr.bf16.mxu0 %v1637_v1  ;;  %1626 = vmatprep.subr.bf16.mxu1 %v1637_v1  ;;  %v1645_v9 = vld [vmem:[%s1940_s0 + $0x90] sm:$0xff]   ;;  %v1646_v10 = vld [vmem:[%s1940_s0 + $0x18] sm:$0xff]   ;;  %v1648_v12 = vld [vmem:[%s1940_s0 + $0x20] sm:$0xff]  }
   0x5   :  { %1561 = vmatprep.mubr.msk.bf16.mxu0 %vm279_vm0, %v1640_v3  ;;  %1593 = vmatprep.mubr.msk.bf16.mxu1 %vm279_vm0, %v1641_v4  ;;  %v1647_v11 = vld [vmem:[%s1940_s0 + $0x98] sm:$0xff]   ;;  %v1649_v13 = vld [vmem:[%s1940_s0 + $0xa0] sm:$0xff]   ;;  %v1650_v14 = vld [vmem:[%s1940_s0 + $0x28] sm:$0xff]  }
   0x6   :  { %v1651_v15 = vld [vmem:[%s1940_s0 + $0xa8] sm:$0xff]   ;;  %v1652_v16 = vld [vmem:[%s1940_s0 + $0x30] sm:$0xff]  }
   0x7   :  { %1556 = vmatpush3.bf16.msra.mxu0 %v1637_v1  ;;  %1630 = vmatpush3.bf16.msra.mxu1 %v1637_v1  ;;  %v1653_v17 = vld [vmem:[%s1940_s0 + $0xb0] sm:$0xff]  }
   0x8   :  { %1557 = vmatprep.subr.bf16.mxu0 %v1638_v2  ;;  %1627 = vmatprep.subr.bf16.mxu1 %v1638_v2 }
   0xb   :  { %1558 = vmatpush3.bf16.msra.mxu0 %v1638_v2  ;;  %1631 = vmatpush3.bf16.msra.mxu1 %v1638_v2 }
   0xc   :  { %1559 = vmatprep.subr.bf16.mxu0 %v1639_v5  ;;  %1628 = vmatprep.subr.bf16.mxu1 %v1639_v5 }
   0xf   :  { %1560 = vmatpush3.bf16.msra.mxu0 %v1639_v5  ;;  %1632 = vmatpush3.bf16.msra.mxu1 %v1639_v5 }
  0x12   :  { %1562 = vmatmul.mubr.msk.bf16.vlgmr.msra.gmra.mrb[0].mxu0 %vm279_vm0, %v1642_v6  ;;  %1594 = vmatmul.mubr.msk.bf16.vlgmr.msra.gmra.mrb[0].mxu1 %vm279_vm0, %v1643_v7 }
  0x13   :  { %1565 = vmatprep.mubr.msk.bf16.mxu0 %vm279_vm0, %v1644_v8  ;;  %1597 = vmatprep.mubr.msk.bf16.mxu1 %vm279_vm0, %v1645_v9 }
  0x1a   :  { %1566 = vmatmul.mubr.msk.bf16.gmra.mrb[4].mxu0 %vm279_vm0, %v1646_v10  ;;  %1598 = vmatmul.mubr.msk.bf16.gmra.mrb[4].mxu1 %vm279_vm0, %v1647_v11 }
  0x1b   :  { %1569 = vmatprep.mubr.msk.bf16.mxu0 %vm279_vm0, %v1648_v12  ;;  %1601 = vmatprep.mubr.msk.bf16.mxu1 %vm279_vm0, %v1649_v13 }
  0x22   :  { %1570 = vmatmul.mubr.msk.bf16.gmra.mrb[8].mxu0 %vm279_vm0, %v1650_v14  ;;  %1602 = vmatmul.mubr.msk.bf16.gmra.mrb[8].mxu1 %vm279_vm0, %v1651_v15 }
  0x23   :  { %1573 = vmatprep.mubr.msk.bf16.mxu0 %vm279_vm0, %v1652_v16  ;;  %1605 = vmatprep.mubr.msk.bf16.mxu1 %vm279_vm0, %v1653_v17 }
  0x24   :  { %8 = vsyncpa [#allocation3], 0  ;;  %v1654_v18 = vld [vmem:[%s1940_s0 + $0x38] sm:$0xff]   ;;  %v1656_v20 = vld [vmem:[%s1940_s0 + $0x40] sm:$0xff]  }
  0x25   :  { %v1655_v19 = vld [vmem:[%s1940_s0 + $0xb8] sm:$0xff]   ;;  %v1657_v21 = vld [vmem:[%s1940_s0 + $0xc0] sm:$0xff]   ;;  %v1658_v22 = vld [vmem:[%s1940_s0 + $0x48] sm:$0xff]  }
  0x26   :  { %v1659_v23 = vld [vmem:[%s1940_s0 + $0xc8] sm:$0xff]   ;;  %v1660_v24 = vld [vmem:[%s1940_s0 + $0x50] sm:$0xff]   ;;  %v1662_v26 = vld [vmem:[%s1940_s0 + $0x58] sm:$0xff]  }
  0x27   :  { %v1661_v25 = vld [vmem:[%s1940_s0 + $0xd0] sm:$0xff]   ;;  %v1663_v27 = vld [vmem:[%s1940_s0 + $0xd8] sm:$0xff]   ;;  %v1664_v28 = vld [vmem:[%s1940_s0 + $0x60] sm:$0xff]  }
  0x28   :  { %v1665_v29 = vld [vmem:[%s1940_s0 + $0xe0] sm:$0xff]   ;;  %v1666_v30 = vld [vmem:[%s1940_s0 + $0x68] sm:$0xff]   ;;  %v1668_v32 = vld [vmem:[%s1940_s0 + $0x70] sm:$0xff]  }
  0x29   :  { %v1667_v31 = vld [vmem:[%s1940_s0 + $0xe8] sm:$0xff]   ;;  %v1669_v33 = vld [vmem:[%s1940_s0 + $0xf0] sm:$0xff]   ;;  %v1670_v34 = vld [vmem:[%s1940_s0 + $0x78] sm:$0xff]  }
  0x2a   :  { %1574 = vmatmul.mubr.msk.bf16.gmra.mrb[12].mxu0 %vm279_vm0, %v1654_v18  ;;  %1606 = vmatmul.mubr.msk.bf16.gmra.mrb[12].mxu1 %vm279_vm0, %v1655_v19  ;;  %v1671_v35 = vld [vmem:[%s1940_s0 + $0xf8] sm:$0xff]   ;;  %v1862_v36 = vld [vmem:[%s1942_s2] ss:$0 sm:$0xff]  ;;  %s1696_s0 = smov [#allocation2]  }
  0x2b   :  { %1577 = vmatprep.mubr.msk.bf16.mxu0 %vm279_vm0, %v1656_v20  ;;  %1609 = vmatprep.mubr.msk.bf16.mxu1 %vm279_vm0, %v1657_v21  ;;  %s1118_s2 = sshll.u32 %s1696_s0, 4  ;;  %s1119_s2 = int_to_ptr.vmem [resolvable:$true] %s1118_s2 }
  0x2c   :  { %s1672_s1 = scalar_lea.vmem %s1119_s2, 4096  ;;  %p1677_p1 = scmp.lt.s32.totalorder %s1119_s2, %s1119_s2 }
  0x2d   :  { %p1673_p0 = scmp.ne.s32.totalorder %s1119_s2, %s1672_s1  ;;  %p1678_p2 = scmp.lt.s32.totalorder %s1672_s1, %s1672_s1 }
  0x2f   :  { %p1679_p3 = por %p1678_p2, %p1677_p1 }
  0x31   :  { %p1680_p4 = pnand %p1679_p3, %p1673_p0 }
  0x32   :  { %1578 = vmatmul.mubr.msk.bf16.gmra.mrb[16].mxu0 %vm279_vm0, %v1658_v22  ;;  %1610 = vmatmul.mubr.msk.bf16.gmra.mrb[16].mxu1 %vm279_vm0, %v1659_v23 }
  0x33   :  { %1581 = vmatprep.mubr.msk.bf16.mxu0 %vm279_vm0, %v1660_v24  ;;  %1613 = vmatprep.mubr.msk.bf16.mxu1 %vm279_vm0, %v1661_v25 }
  0x3a   :  { %1582 = vmatmul.mubr.msk.bf16.gmra.mrb[20].mxu0 %vm279_vm0, %v1662_v26  ;;  %1614 = vmatmul.mubr.msk.bf16.gmra.mrb[20].mxu1 %vm279_vm0, %v1663_v27 }
  0x3b   :  { %1585 = vmatprep.mubr.msk.bf16.mxu0 %vm279_vm0, %v1664_v28  ;;  %1617 = vmatprep.mubr.msk.bf16.mxu1 %vm279_vm0, %v1665_v29 }
  0x42   :  { %1586 = vmatmul.mubr.msk.bf16.gmra.mrb[24].mxu0 %vm279_vm0, %v1666_v30  ;;  %1618 = vmatmul.mubr.msk.bf16.gmra.mrb[24].mxu1 %vm279_vm0, %v1667_v31 }
  0x43   :  { %1589 = vmatprep.mubr.msk.bf16.mxu0 %vm279_vm0, %v1668_v32  ;;  %1621 = vmatprep.mubr.msk.bf16.mxu1 %vm279_vm0, %v1669_v33 }
  0x4a   :  { %1590 = vmatmul.mubr.msk.bf16.gmra.mrb[28].mxu0 %vm279_vm0, %v1670_v34  ;;  %1622 = vmatmul.mubr.msk.bf16.gmra.mrb[28].mxu1 %vm279_vm0, %v1671_v35 }
  0xe5   :  { %v1563_v37 = vpop.f32.mrb[0].mxu0  ;;  %v1595_v38 = vpop.f32.mrb[0].mxu1 }
  0xe6   :  { %v419_v39 = vadd.f32 %v1563_v37, %v1862_v36  ;;  %v547_v40 = vadd.f32 %v1595_v38, %v1862_v36  ;;  %v410_v41 = vpop.f32.mrb[1].mxu0  ;;  %v538_v42 = vpop.f32.mrb[1].mxu1 }
  0xe7   :  { %v411_v43 = vadd.f32 %v1862_v36, %v410_v41  ;;  %v539_v44 = vadd.f32 %v1862_v36, %v538_v42  ;;  %v1564_v45 = vpop.f32.mrb[2].mxu0  ;;  %v1596_v46 = vpop.f32.mrb[2].mxu1 }
  0xe8   :  { %v667_v47 = vmul.f32 0.2, %v419_v39  ;;  %v699_v48 = vmul.f32 0.2, %v547_v40  ;;  %v422_v49 = vadd.f32 %v1564_v45, %v1862_v36  ;;  %v550_v50 = vadd.f32 %v1596_v46, %v1862_v36  ;;  %v413_v51 = vpop.f32.mrb[3].mxu0  ;;  %v541_v52 = vpop.f32.mrb[3].mxu1 }
  0xe9   :  { %v665_v53 = vmul.f32 0.2, %v411_v43  ;;  %v697_v54 = vmul.f32 0.2, %v539_v44  ;;  %v414_v55 = vadd.f32 %v1862_v36, %v413_v51  ;;  %v542_v56 = vadd.f32 %v1862_v36, %v541_v52 }
  0xea   :  { %v668_v57 = vmul.f32 0.2, %v422_v49  ;;  %v700_v58 = vmul.f32 0.2, %v550_v50  ;;  %v731_v61 = vmax.f32 %v419_v39, %v667_v47  ;;  %v763_v62 = vmax.f32 %v547_v40, %v699_v48 }
  0xeb   :  { %v666_v59 = vmul.f32 0.2, %v414_v55  ;;  %v698_v60 = vmul.f32 0.2, %v542_v56  ;;  %v729_v1 = vmax.f32 %v411_v43, %v665_v53  ;;  %v761_v2 = vmax.f32 %v539_v44, %v697_v54 }
  0xec   :  { %v732_v63 = vmax.f32 %v422_v49, %v668_v57  ;;  %v764_v0 = vmax.f32 %v550_v50, %v700_v58 }
  0xed   :  { %v730_v3 = vmax.f32 %v414_v55, %v666_v59  ;;  %v762_v4 = vmax.f32 %v542_v56, %v698_v60  ;;  %v1567_v5 = vpop.f32.mrb[4].mxu0  ;;  %v1599_v6 = vpop.f32.mrb[4].mxu1 }
  0xee   :  { %v1334_v7 = vpack.c.bf16 %v732_v63, %v731_v61  ;;  %v1414_v8 = vpack.c.bf16 %v764_v0, %v763_v62  ;;  %v435_v9 = vadd.f32 %v1567_v5, %v1862_v36  ;;  %v563_v10 = vadd.f32 %v1599_v6, %v1862_v36  ;;  %v426_v11 = vpop.f32.mrb[5].mxu0  ;;  %v554_v12 = vpop.f32.mrb[5].mxu1 }
  0xef   :  { %v1329_v13 = vpack.c.bf16 %v730_v3, %v729_v1  ;;  %v1409_v14 = vpack.c.bf16 %v762_v4, %v761_v2  ;;  %v427_v15 = vadd.f32 %v1862_v36, %v426_v11  ;;  %v555_v16 = vadd.f32 %v1862_v36, %v554_v12  ;;  %v1568_v17 = vpop.f32.mrb[6].mxu0  ;;  %v1600_v18 = vpop.f32.mrb[6].mxu1 }
  0xf0   :  { %1486 = vst [vmem:[#allocation2 + $0x8] sm:$0xff] %v1334_v7   ;;  %1502 = vst [vmem:[#allocation2 + $0x88] sm:$0xff] %v1414_v8   ;;  %v671_v19 = vmul.f32 0.2, %v435_v9  ;;  %v703_v20 = vmul.f32 0.2, %v563_v10  ;;  %v438_v21 = vadd.f32 %v1568_v17, %v1862_v36  ;;  %v566_v22 = vadd.f32 %v1600_v18, %v1862_v36 }
  0xf1   :  { %v429_v23 = vpop.f32.mrb[7].mxu0  ;;  %v557_v24 = vpop.f32.mrb[7].mxu1  ;;  %1330 = vst [vmem:[#allocation2] sm:$0xff] %v1329_v13   ;;  %1501 = vst [vmem:[#allocation2 + $0x80] sm:$0xff] %v1409_v14   ;;  %v669_v25 = vmul.f32 0.2, %v427_v15 }
  0xf2   :  { %v701_v26 = vmul.f32 0.2, %v555_v16  ;;  %v430_v27 = vadd.f32 %v1862_v36, %v429_v23  ;;  %v558_v28 = vadd.f32 %v1862_v36, %v557_v24  ;;  %v672_v29 = vmul.f32 0.2, %v438_v21 }
  0xf3   :  { %v704_v30 = vmul.f32 0.2, %v566_v22  ;;  %v735_v33 = vmax.f32 %v435_v9, %v671_v19  ;;  %v767_v34 = vmax.f32 %v563_v10, %v703_v20  ;;  %v733_v38 = vmax.f32 %v427_v15, %v669_v25 }
  0xf4   :  { %v670_v31 = vmul.f32 0.2, %v430_v27  ;;  %v702_v32 = vmul.f32 0.2, %v558_v28  ;;  %v736_v35 = vmax.f32 %v438_v21, %v672_v29  ;;  %v765_v39 = vmax.f32 %v555_v16, %v701_v26 }
  0xf5   :  { %v768_v37 = vmax.f32 %v566_v22, %v704_v30  ;;  %v1571_v42 = vpop.f32.mrb[8].mxu0  ;;  %v1603_v43 = vpop.f32.mrb[8].mxu1 }
  0xf6   :  { %v734_v40 = vmax.f32 %v430_v27, %v670_v31  ;;  %v766_v41 = vmax.f32 %v558_v28, %v702_v32  ;;  %v1344_v44 = vpack.c.bf16 %v736_v35, %v735_v33  ;;  %v451_v46 = vadd.f32 %v1571_v42, %v1862_v36  ;;  %v442_v48 = vpop.f32.mrb[9].mxu0  ;;  %v570_v49 = vpop.f32.mrb[9].mxu1 }
  0xf7   :  { %v1424_v45 = vpack.c.bf16 %v768_v37, %v767_v34  ;;  %v579_v47 = vadd.f32 %v1603_v43, %v1862_v36  ;;  %v443_v52 = vadd.f32 %v1862_v36, %v442_v48  ;;  %v571_v53 = vadd.f32 %v1862_v36, %v570_v49  ;;  %v1572_v54 = vpop.f32.mrb[10].mxu0  ;;  %v1604_v55 = vpop.f32.mrb[10].mxu1 }
  0xf8   :  { %v1339_v50 = vpack.c.bf16 %v734_v40, %v733_v38  ;;  %v1419_v51 = vpack.c.bf16 %v766_v41, %v765_v39  ;;  %1488 = vst [vmem:[#allocation2 + $0x18] sm:$0xff] %v1344_v44   ;;  %v675_v56 = vmul.f32 0.2, %v451_v46  ;;  %v454_v58 = vadd.f32 %v1572_v54, %v1862_v36  ;;  %v445_v60 = vpop.f32.mrb[11].mxu0  ;;  %v573_v61 = vpop.f32.mrb[11].mxu1 }
  0xf9   :  { %1504 = vst [vmem:[#allocation2 + $0x98] sm:$0xff] %v1424_v45   ;;  %v707_v57 = vmul.f32 0.2, %v579_v47  ;;  %v582_v59 = vadd.f32 %v1604_v55, %v1862_v36  ;;  %v673_v62 = vmul.f32 0.2, %v443_v52  ;;  %v446_v0 = vadd.f32 %v1862_v36, %v445_v60 }
  0xfa   :  { %1487 = vst [vmem:[#allocation2 + $0x10] sm:$0xff] %v1339_v50   ;;  %1503 = vst [vmem:[#allocation2 + $0x90] sm:$0xff] %v1419_v51   ;;  %v705_v63 = vmul.f32 0.2, %v571_v53  ;;  %v574_v1 = vadd.f32 %v1862_v36, %v573_v61  ;;  %v676_v2 = vmul.f32 0.2, %v454_v58  ;;  %v739_v6 = vmax.f32 %v451_v46, %v675_v56 }
  0xfb   :  { %v708_v3 = vmul.f32 0.2, %v582_v59  ;;  %v674_v4 = vmul.f32 0.2, %v446_v0  ;;  %v771_v7 = vmax.f32 %v579_v47, %v707_v57  ;;  %v737_v10 = vmax.f32 %v443_v52, %v673_v62 }
  0xfc   :  { %v706_v5 = vmul.f32 0.2, %v574_v1  ;;  %v740_v8 = vmax.f32 %v454_v58, %v676_v2  ;;  %v769_v11 = vmax.f32 %v571_v53, %v705_v63 }
  0xfd   :  { %v772_v9 = vmax.f32 %v582_v59, %v708_v3  ;;  %v738_v12 = vmax.f32 %v446_v0, %v674_v4  ;;  %v1575_v14 = vpop.f32.mrb[12].mxu0  ;;  %v1607_v15 = vpop.f32.mrb[12].mxu1 }
  0xfe   :  { %v770_v13 = vmax.f32 %v574_v1, %v706_v5  ;;  %v1354_v16 = vpack.c.bf16 %v740_v8, %v739_v6  ;;  %v467_v18 = vadd.f32 %v1575_v14, %v1862_v36  ;;  %v595_v19 = vadd.f32 %v1607_v15, %v1862_v36  ;;  %v458_v20 = vpop.f32.mrb[13].mxu0  ;;  %v586_v21 = vpop.f32.mrb[13].mxu1 }
  0xff   :  { %v1434_v17 = vpack.c.bf16 %v772_v9, %v771_v7  ;;  %v1349_v22 = vpack.c.bf16 %v738_v12, %v737_v10  ;;  %v459_v24 = vadd.f32 %v1862_v36, %v458_v20  ;;  %v587_v25 = vadd.f32 %v1862_v36, %v586_v21  ;;  %v1576_v26 = vpop.f32.mrb[14].mxu0  ;;  %v1608_v27 = vpop.f32.mrb[14].mxu1 }
 0x100   :  { %v1429_v23 = vpack.c.bf16 %v770_v13, %v769_v11  ;;  %1490 = vst [vmem:[#allocation2 + $0x28] sm:$0xff] %v1354_v16   ;;  %v679_v28 = vmul.f32 0.2, %v467_v18  ;;  %v711_v29 = vmul.f32 0.2, %v595_v19  ;;  %v470_v30 = vadd.f32 %v1576_v26, %v1862_v36  ;;  %v461_v32 = vpop.f32.mrb[15].mxu0 }
 0x101   :  { %1506 = vst [vmem:[#allocation2 + $0xa8] sm:$0xff] %v1434_v17   ;;  %v598_v31 = vadd.f32 %v1608_v27, %v1862_v36  ;;  %v589_v33 = vpop.f32.mrb[15].mxu1  ;;  %1489 = vst [vmem:[#allocation2 + $0x20] sm:$0xff] %v1349_v22   ;;  %v677_v34 = vmul.f32 0.2, %v459_v24  ;;  %v462_v37 = vadd.f32 %v1862_v36, %v461_v32 }
 0x102   :  { %1505 = vst [vmem:[#allocation2 + $0xa0] sm:$0xff] %v1429_v23   ;;  %v709_v35 = vmul.f32 0.2, %v587_v25  ;;  %v590_v38 = vadd.f32 %v1862_v36, %v589_v33  ;;  %v680_v39 = vmul.f32 0.2, %v470_v30  ;;  %v743_v43 = vmax.f32 %v467_v18, %v679_v28 }
 0x103   :  { %v712_v40 = vmul.f32 0.2, %v598_v31  ;;  %v678_v41 = vmul.f32 0.2, %v462_v37  ;;  %v775_v44 = vmax.f32 %v595_v19, %v711_v29  ;;  %v741_v47 = vmax.f32 %v459_v24, %v677_v34 }
 0x104   :  { %v710_v42 = vmul.f32 0.2, %v590_v38  ;;  %v744_v45 = vmax.f32 %v470_v30, %v680_v39  ;;  %v773_v48 = vmax.f32 %v587_v25, %v709_v35 }
 0x105   :  { %v776_v46 = vmax.f32 %v598_v31, %v712_v40  ;;  %v742_v49 = vmax.f32 %v462_v37, %v678_v41  ;;  %v1579_v51 = vpop.f32.mrb[16].mxu0  ;;  %v1611_v52 = vpop.f32.mrb[16].mxu1 }
 0x106   :  { %v774_v50 = vmax.f32 %v590_v38, %v710_v42  ;;  %v1364_v53 = vpack.c.bf16 %v744_v45, %v743_v43  ;;  %v483_v55 = vadd.f32 %v1579_v51, %v1862_v36  ;;  %v611_v56 = vadd.f32 %v1611_v52, %v1862_v36  ;;  %v474_v57 = vpop.f32.mrb[17].mxu0  ;;  %v602_v58 = vpop.f32.mrb[17].mxu1 }
 0x107   :  { %v1444_v54 = vpack.c.bf16 %v776_v46, %v775_v44  ;;  %v1359_v59 = vpack.c.bf16 %v742_v49, %v741_v47  ;;  %v475_v61 = vadd.f32 %v1862_v36, %v474_v57  ;;  %v603_v62 = vadd.f32 %v1862_v36, %v602_v58  ;;  %v1580_v63 = vpop.f32.mrb[18].mxu0  ;;  %v1612_v0 = vpop.f32.mrb[18].mxu1 }
 0x108   :  { %v1439_v60 = vpack.c.bf16 %v774_v50, %v773_v48  ;;  %1492 = vst [vmem:[#allocation2 + $0x38] sm:$0xff] %v1364_v53   ;;  %v683_v1 = vmul.f32 0.2, %v483_v55  ;;  %v715_v2 = vmul.f32 0.2, %v611_v56  ;;  %v486_v3 = vadd.f32 %v1580_v63, %v1862_v36  ;;  %v477_v5 = vpop.f32.mrb[19].mxu0 }
 0x109   :  { %1508 = vst [vmem:[#allocation2 + $0xb8] sm:$0xff] %v1444_v54   ;;  %v614_v4 = vadd.f32 %v1612_v0, %v1862_v36  ;;  %v605_v6 = vpop.f32.mrb[19].mxu1  ;;  %1491 = vst [vmem:[#allocation2 + $0x30] sm:$0xff] %v1359_v59   ;;  %v681_v7 = vmul.f32 0.2, %v475_v61  ;;  %v478_v9 = vadd.f32 %v1862_v36, %v477_v5 }
 0x10a   :  { %1507 = vst [vmem:[#allocation2 + $0xb0] sm:$0xff] %v1439_v60   ;;  %v713_v8 = vmul.f32 0.2, %v603_v62  ;;  %v606_v10 = vadd.f32 %v1862_v36, %v605_v6  ;;  %v684_v11 = vmul.f32 0.2, %v486_v3  ;;  %v747_v15 = vmax.f32 %v483_v55, %v683_v1 }
 0x10b   :  { %v716_v12 = vmul.f32 0.2, %v614_v4  ;;  %v682_v13 = vmul.f32 0.2, %v478_v9  ;;  %v779_v16 = vmax.f32 %v611_v56, %v715_v2  ;;  %v745_v19 = vmax.f32 %v475_v61, %v681_v7 }
 0x10c   :  { %v714_v14 = vmul.f32 0.2, %v606_v10  ;;  %v748_v17 = vmax.f32 %v486_v3, %v684_v11  ;;  %v777_v20 = vmax.f32 %v603_v62, %v713_v8 }
 0x10d   :  { %v780_v18 = vmax.f32 %v614_v4, %v716_v12  ;;  %v746_v21 = vmax.f32 %v478_v9, %v682_v13  ;;  %v1583_v23 = vpop.f32.mrb[20].mxu0  ;;  %v1615_v24 = vpop.f32.mrb[20].mxu1 }
 0x10e   :  { %v778_v22 = vmax.f32 %v606_v10, %v714_v14  ;;  %v1374_v25 = vpack.c.bf16 %v748_v17, %v747_v15  ;;  %v499_v27 = vadd.f32 %v1583_v23, %v1862_v36  ;;  %v627_v28 = vadd.f32 %v1615_v24, %v1862_v36  ;;  %v490_v29 = vpop.f32.mrb[21].mxu0  ;;  %v618_v30 = vpop.f32.mrb[21].mxu1 }
 0x10f   :  { %v1454_v26 = vpack.c.bf16 %v780_v18, %v779_v16  ;;  %v1369_v31 = vpack.c.bf16 %v746_v21, %v745_v19  ;;  %v491_v33 = vadd.f32 %v1862_v36, %v490_v29  ;;  %v619_v34 = vadd.f32 %v1862_v36, %v618_v30  ;;  %v1584_v35 = vpop.f32.mrb[22].mxu0  ;;  %v1616_v37 = vpop.f32.mrb[22].mxu1 }
 0x110   :  { %v1449_v32 = vpack.c.bf16 %v778_v22, %v777_v20  ;;  %1494 = vst [vmem:[#allocation2 + $0x48] sm:$0xff] %v1374_v25   ;;  %v687_v38 = vmul.f32 0.2, %v499_v27  ;;  %v719_v39 = vmul.f32 0.2, %v627_v28  ;;  %v502_v40 = vadd.f32 %v1584_v35, %v1862_v36  ;;  %v493_v42 = vpop.f32.mrb[23].mxu0 }
 0x111   :  { %1510 = vst [vmem:[#allocation2 + $0xc8] sm:$0xff] %v1454_v26   ;;  %v630_v41 = vadd.f32 %v1616_v37, %v1862_v36  ;;  %v621_v43 = vpop.f32.mrb[23].mxu1  ;;  %1493 = vst [vmem:[#allocation2 + $0x40] sm:$0xff] %v1369_v31   ;;  %v685_v44 = vmul.f32 0.2, %v491_v33  ;;  %v494_v46 = vadd.f32 %v1862_v36, %v493_v42 }
 0x112   :  { %1509 = vst [vmem:[#allocation2 + $0xc0] sm:$0xff] %v1449_v32   ;;  %v717_v45 = vmul.f32 0.2, %v619_v34  ;;  %v622_v47 = vadd.f32 %v1862_v36, %v621_v43  ;;  %v688_v48 = vmul.f32 0.2, %v502_v40  ;;  %v751_v52 = vmax.f32 %v499_v27, %v687_v38 }
 0x113   :  { %v720_v49 = vmul.f32 0.2, %v630_v41  ;;  %v686_v50 = vmul.f32 0.2, %v494_v46  ;;  %v783_v53 = vmax.f32 %v627_v28, %v719_v39  ;;  %v749_v56 = vmax.f32 %v491_v33, %v685_v44 }
 0x114   :  { %v718_v51 = vmul.f32 0.2, %v622_v47  ;;  %v752_v54 = vmax.f32 %v502_v40, %v688_v48  ;;  %v781_v57 = vmax.f32 %v619_v34, %v717_v45 }
 0x115   :  { %v784_v55 = vmax.f32 %v630_v41, %v720_v49  ;;  %v750_v58 = vmax.f32 %v494_v46, %v686_v50  ;;  %v1587_v60 = vpop.f32.mrb[24].mxu0  ;;  %v1619_v61 = vpop.f32.mrb[24].mxu1 }
 0x116   :  { %v782_v59 = vmax.f32 %v622_v47, %v718_v51  ;;  %v1384_v62 = vpack.c.bf16 %v752_v54, %v751_v52  ;;  %v515_v0 = vadd.f32 %v1587_v60, %v1862_v36  ;;  %v643_v1 = vadd.f32 %v1619_v61, %v1862_v36  ;;  %v506_v2 = vpop.f32.mrb[25].mxu0  ;;  %v634_v3 = vpop.f32.mrb[25].mxu1 }
 0x117   :  { %v1464_v63 = vpack.c.bf16 %v784_v55, %v783_v53  ;;  %v1379_v4 = vpack.c.bf16 %v750_v58, %v749_v56  ;;  %v507_v6 = vadd.f32 %v1862_v36, %v506_v2  ;;  %v635_v7 = vadd.f32 %v1862_v36, %v634_v3  ;;  %v1588_v8 = vpop.f32.mrb[26].mxu0  ;;  %v1620_v9 = vpop.f32.mrb[26].mxu1 }
 0x118   :  { %v1459_v5 = vpack.c.bf16 %v782_v59, %v781_v57  ;;  %1496 = vst [vmem:[#allocation2 + $0x58] sm:$0xff] %v1384_v62   ;;  %v691_v10 = vmul.f32 0.2, %v515_v0  ;;  %v723_v11 = vmul.f32 0.2, %v643_v1  ;;  %v518_v12 = vadd.f32 %v1588_v8, %v1862_v36  ;;  %v509_v14 = vpop.f32.mrb[27].mxu0 }
 0x119   :  { %1512 = vst [vmem:[#allocation2 + $0xd8] sm:$0xff] %v1464_v63   ;;  %v646_v13 = vadd.f32 %v1620_v9, %v1862_v36  ;;  %v637_v15 = vpop.f32.mrb[27].mxu1  ;;  %1495 = vst [vmem:[#allocation2 + $0x50] sm:$0xff] %v1379_v4   ;;  %v689_v16 = vmul.f32 0.2, %v507_v6  ;;  %v510_v18 = vadd.f32 %v1862_v36, %v509_v14 }
 0x11a   :  { %1511 = vst [vmem:[#allocation2 + $0xd0] sm:$0xff] %v1459_v5   ;;  %v721_v17 = vmul.f32 0.2, %v635_v7  ;;  %v638_v19 = vadd.f32 %v1862_v36, %v637_v15  ;;  %v692_v20 = vmul.f32 0.2, %v518_v12  ;;  %v755_v24 = vmax.f32 %v515_v0, %v691_v10 }
 0x11b   :  { %v724_v21 = vmul.f32 0.2, %v646_v13  ;;  %v690_v22 = vmul.f32 0.2, %v510_v18  ;;  %v787_v25 = vmax.f32 %v643_v1, %v723_v11  ;;  %v753_v28 = vmax.f32 %v507_v6, %v689_v16 }
 0x11c   :  { %v722_v23 = vmul.f32 0.2, %v638_v19  ;;  %v756_v26 = vmax.f32 %v518_v12, %v692_v20  ;;  %v785_v29 = vmax.f32 %v635_v7, %v721_v17 }
 0x11d   :  { %v788_v27 = vmax.f32 %v646_v13, %v724_v21  ;;  %v754_v30 = vmax.f32 %v510_v18, %v690_v22  ;;  %v1591_v32 = vpop.f32.mrb[28].mxu0  ;;  %v1623_v33 = vpop.f32.mrb[28].mxu1 }
 0x11e   :  { %v786_v31 = vmax.f32 %v638_v19, %v722_v23  ;;  %v1394_v34 = vpack.c.bf16 %v756_v26, %v755_v24  ;;  %v531_v37 = vadd.f32 %v1591_v32, %v1862_v36  ;;  %v659_v38 = vadd.f32 %v1623_v33, %v1862_v36  ;;  %v522_v39 = vpop.f32.mrb[29].mxu0  ;;  %v650_v40 = vpop.f32.mrb[29].mxu1 }
 0x11f   :  { %v1474_v35 = vpack.c.bf16 %v788_v27, %v787_v25  ;;  %v1389_v41 = vpack.c.bf16 %v754_v30, %v753_v28  ;;  %v523_v43 = vadd.f32 %v1862_v36, %v522_v39  ;;  %v651_v44 = vadd.f32 %v1862_v36, %v650_v40  ;;  %v1592_v45 = vpop.f32.mrb[30].mxu0  ;;  %v1624_v46 = vpop.f32.mrb[30].mxu1 }
 0x120   :  { %v1469_v42 = vpack.c.bf16 %v786_v31, %v785_v29  ;;  %1498 = vst [vmem:[#allocation2 + $0x68] sm:$0xff] %v1394_v34   ;;  %v695_v47 = vmul.f32 0.2, %v531_v37  ;;  %v727_v48 = vmul.f32 0.2, %v659_v38  ;;  %v534_v49 = vadd.f32 %v1592_v45, %v1862_v36  ;;  %v525_v51 = vpop.f32.mrb[31].mxu0 }
 0x121   :  { %1514 = vst [vmem:[#allocation2 + $0xe8] sm:$0xff] %v1474_v35   ;;  %v662_v50 = vadd.f32 %v1624_v46, %v1862_v36  ;;  %v653_v52 = vpop.f32.mrb[31].mxu1  ;;  %1497 = vst [vmem:[#allocation2 + $0x60] sm:$0xff] %v1389_v41   ;;  %v693_v53 = vmul.f32 0.2, %v523_v43  ;;  %v526_v55 = vadd.f32 %v1862_v36, %v525_v51 }
 0x122   :  { %1513 = vst [vmem:[#allocation2 + $0xe0] sm:$0xff] %v1469_v42   ;;  %v725_v54 = vmul.f32 0.2, %v651_v44  ;;  %v654_v56 = vadd.f32 %v1862_v36, %v653_v52  ;;  %v696_v57 = vmul.f32 0.2, %v534_v49  ;;  %v759_v61 = vmax.f32 %v531_v37, %v695_v47 }
 0x123   :  { %v728_v58 = vmul.f32 0.2, %v662_v50  ;;  %v694_v59 = vmul.f32 0.2, %v526_v55  ;;  %v791_v62 = vmax.f32 %v659_v38, %v727_v48  ;;  %v757_v1 = vmax.f32 %v523_v43, %v693_v53 }
 0x124   :  { %v726_v60 = vmul.f32 0.2, %v654_v56  ;;  %v760_v63 = vmax.f32 %v534_v49, %v696_v57  ;;  %v789_v2 = vmax.f32 %v651_v44, %v725_v54 }
 0x125   :  { %v792_v0 = vmax.f32 %v662_v50, %v728_v58  ;;  %v758_v3 = vmax.f32 %v526_v55, %v694_v59 }
 0x126   :  { %v790_v4 = vmax.f32 %v654_v56, %v726_v60  ;;  %v1404_v5 = vpack.c.bf16 %v760_v63, %v759_v61 }
 0x127   :  { %v1484_v6 = vpack.c.bf16 %v792_v0, %v791_v62  ;;  %v1399_v7 = vpack.c.bf16 %v758_v3, %v757_v1 }
 0x128   :  { %v1479_v8 = vpack.c.bf16 %v790_v4, %v789_v2  ;;  %1500 = vst [vmem:[#allocation2 + $0x78] sm:$0xff] %v1404_v5  }
 0x129   :  { %1516 = vst [vmem:[#allocation2 + $0xf8] sm:$0xff] %v1484_v6   ;;  %1499 = vst [vmem:[#allocation2 + $0x70] sm:$0xff] %v1399_v7  }
 0x12a   :  { %1515 = vst [vmem:[#allocation2 + $0xf0] sm:$0xff] %v1479_v8  }
 0x12b   :  { %1683 = shalt.err (!%p1680_p4)
}
 0x12c   :  { %s1684_s5 = scalar_lea.hbm %s1943_s3, 4096 }
 0x12d   :  { %p1685_p5 = scmp.ne.s32.totalorder %s1943_s3, %s1684_s5  ;;  %p1688_p6 = scmp.lt.u32.totalorder %s1684_s5, %s1943_s3 }
 0x12f   :  { %p1690_p7 = pnand %p1688_p6, %p1685_p5 }
 0x131   :  { %1693 = shalt.err (!%p1690_p7)
}
 0x132   :  { %s1697_s10 = smov 64   ;;  %s1698_s11 = smov 4  }
 0x133   :  { %1124 = dma.vmem_to_hbm [thread:$0]  %s1119_s2, 4096, %s1943_s3, [#allocation3], %s1697_s10, %s1697_s10, %s1698_s11  }
 0x134   :  { %1694 = dma.done.wait [#allocation3], 4096  }
 0x135   :  { %1695 = vsyncadd [#allocation3], 4294963200 }
 0x136   :  { %1128 = vsyncpa [#allocation3], 1 }

</bundles_post_ra>
